<compile_context>
chip_gen: v5e
topology: v5e:2x2
jax: 0.10.0
libtpu: 0.0.40
codegen_flags: <defaults>
</compile_context>

<pallas_src>
import jax
import jax.numpy as jnp
from jax.experimental import pallas as pl
from jax.experimental.pallas import tpu as pltpu


def _round_up(n, m):
    return ((n + m - 1) // m) * m


def _mlp_kernel(x_ref, w1_ref, b1_ref, w2_ref, b2_ref, w3_ref, b3_ref,
                logits_ref, logprob_ref):
    # Cast the f32 activation tile to bf16 in-kernel (no extra XLA pass over
    # HBM); all matmuls accumulate in f32 on the MXU.
    x = x_ref[...].astype(jnp.bfloat16)

    h1 = jnp.dot(x, w1_ref[...], preferred_element_type=jnp.float32) + b1_ref[...]
    h1 = jnp.maximum(h1, 0.0)

    h2 = jnp.dot(h1.astype(jnp.bfloat16), w2_ref[...],
                 preferred_element_type=jnp.float32) + b2_ref[...]
    h2 = jnp.maximum(h2, 0.0)

    logits = jnp.dot(h2.astype(jnp.bfloat16), w3_ref[...],
                     preferred_element_type=jnp.float32) + b3_ref[...]
    logits_ref[...] = logits

    # Numerically stable log_softmax over the true class axis (no padding).
    m = jnp.max(logits, axis=-1, keepdims=True)
    shifted = logits - m
    lse = jnp.log(jnp.sum(jnp.exp(shifted), axis=-1, keepdims=True))
    logprob_ref[...] = shifted - lse


def _pick_batch_tile(B):
    """Batch tile: <=512 rows, multiple of 16; keep >=2 grid steps when the
    batch is big enough so both v7x TensorCores get work."""
    TM = min(512, _round_up(B, 16))
    if B > 32 and pl.cdiv(B, TM) < 2:
        TM = _round_up(pl.cdiv(B, 2), 16)
    return TM


@jax.jit
def mlp_forward(x, w1, b1, w2, b2, w3, b3):
    """x: f32 (B, F); w1/w2/w3: bf16 (pre-cast via prepare_params); b*: f32."""
    B, F = x.shape
    H1 = w1.shape[1]
    H2 = w2.shape[1]
    C = w3.shape[1]

    TM = _pick_batch_tile(B)
    grid = (pl.cdiv(B, TM),)

    resident = lambda shape: pl.BlockSpec(shape, lambda i: (0, 0))

    logits, logprob = pl.pallas_call(
        _mlp_kernel,
        grid=grid,
        in_specs=[
            pl.BlockSpec((TM, F), lambda i: (i, 0)),   # x tile (f32, cast in-kernel)
            resident((F, H1)),                          # W1 (bf16, VMEM-resident)
            resident((1, H1)),                          # b1 (f32)
            resident((H1, H2)),                         # W2
            resident((1, H2)),                          # b2
            resident((H2, C)),                          # W3
            resident((1, C)),                           # b3
        ],
        out_specs=(
            pl.BlockSpec((TM, C), lambda i: (i, 0)),    # logits
            pl.BlockSpec((TM, C), lambda i: (i, 0)),    # log-probabilities
        ),
        out_shape=(
            jax.ShapeDtypeStruct((B, C), jnp.float32),
            jax.ShapeDtypeStruct((B, C), jnp.float32),
        ),
        compiler_params=pltpu.CompilerParams(
            dimension_semantics=("parallel",),
            vmem_limit_bytes=32 * 1024 * 1024,
        ),
    )(x, w1, b1, w2, b2, w3, b3)

    return logits, logprob


def prepare_params(w1, b1, w2, b2, w3, b3):
    """One-time cast of matmul weights to bf16 (MXU operand dtype); biases
    stay f32. Call once, outside the per-step forward."""
    return (w1.astype(jnp.bfloat16), b1,
            w2.astype(jnp.bfloat16), b2,
            w3.astype(jnp.bfloat16), b3)


def init_params(key, num_features, num_classes, num_hidden_1=128, num_hidden_2=64):
    """Deterministic parameter init mimicking the PyTorch module's __init__."""
    k1, k2, k2b, k3 = jax.random.split(key, 4)

    # linear_1: default Linear init for weight, bias zeroed.
    bound1 = 1.0 / jnp.sqrt(num_features)
    w1 = jax.random.uniform(k1, (num_features, num_hidden_1),
                            minval=-bound1, maxval=bound1, dtype=jnp.float32)
    b1 = jnp.zeros((1, num_hidden_1), jnp.float32)

    # linear_2: weight ~ N(0, 0.1), bias default uniform init.
    w2 = 0.1 * jax.random.normal(k2, (num_hidden_1, num_hidden_2), dtype=jnp.float32)
    bound2 = 1.0 / jnp.sqrt(num_hidden_1)
    b2 = jax.random.uniform(k2b, (1, num_hidden_2),
                            minval=-bound2, maxval=bound2, dtype=jnp.float32)

    # linear_out: weight ~ N(0, 0.1), bias zeroed.
    w3 = 0.1 * jax.random.normal(k3, (num_hidden_2, num_classes), dtype=jnp.float32)
    b3 = jnp.zeros((1, num_classes), jnp.float32)

    return w1, b1, w2, b2, w3, b3


def reference_forward(x, w1, b1, w2, b2, w3, b3):
    # Reference uses the same bf16-rounded matmul operands (f32 accumulate),
    # matching the kernel's MXU precision.
    # TODO(synk): not bit-faithful to a pure-f32 PyTorch forward (~1e-2 diffs);
    # drop the bf16 cast in both kernel and reference if exact f32 is required.
    def bf(a):
        return a.astype(jnp.bfloat16).astype(jnp.float32)

    h1 = jnp.maximum(jnp.dot(bf(x), bf(w1)) + b1, 0.0)
    h2 = jnp.maximum(jnp.dot(bf(h1), bf(w2)) + b2, 0.0)
    logits = jnp.dot(bf(h2), bf(w3)) + b3
    logprob = jax.nn.log_softmax(logits, axis=1)
    return logits, logprob


if __name__ == "__main__":
    key = jax.random.PRNGKey(0)
    kx, kp = jax.random.split(key)

    B, F, C = 8, 32, 16  # small shapes: batch=8, num_features=32, num_classes=16
    x = jax.random.normal(kx, (B, F), dtype=jnp.float32)
    raw_params = init_params(kp, num_features=F, num_classes=C)
    params = prepare_params(*raw_params)

    logits, logprob = mlp_forward(x, *params)
    jax.block_until_ready((logits, logprob))

    ref_logits, ref_logprob = reference_forward(x, *raw_params)
    assert logits.shape == (B, C) and logprob.shape == (B, C)
    assert jnp.allclose(logits, ref_logits, atol=5e-3, rtol=5e-3)
    assert jnp.allclose(logprob, ref_logprob, atol=5e-3, rtol=5e-3)

    print("KERNEL_OK")
</pallas_src>

<mosaic_0001>
module attributes {stable_mosaic.version = 11 : i64} {
  func.func @_mlp_kernel(%arg0: i32, %arg1: memref<16x32xf32, #tpu.memory_space<vmem>>, %arg2: memref<32x128xbf16, #tpu.memory_space<vmem>>, %arg3: memref<1x128xf32, #tpu.memory_space<vmem>>, %arg4: memref<128x64xbf16, #tpu.memory_space<vmem>>, %arg5: memref<1x64xf32, #tpu.memory_space<vmem>>, %arg6: memref<64x16xbf16, #tpu.memory_space<vmem>>, %arg7: memref<1x16xf32, #tpu.memory_space<vmem>>, %arg8: memref<16x16xf32, #tpu.memory_space<vmem>>, %arg9: memref<16x16xf32, #tpu.memory_space<vmem>>) attributes {dimension_semantics = [#tpu.dimension_semantics<parallel>], iteration_bounds = array<i64: 1>, scalar_prefetch = 0 : i64, scratch_operands = 0 : i64, tpu.core_type = #tpu.core_type<tc>, window_params = [{transform_indices = @transform_0, window_bounds = array<i64: 16, 32>}, {pipeline_mode = #tpu.pipeline_mode<synchronous>, transform_indices = @transform_1, window_bounds = array<i64: 32, 128>}, {pipeline_mode = #tpu.pipeline_mode<synchronous>, transform_indices = @transform_2, window_bounds = array<i64: 1, 128>}, {pipeline_mode = #tpu.pipeline_mode<synchronous>, transform_indices = @transform_3, window_bounds = array<i64: 128, 64>}, {pipeline_mode = #tpu.pipeline_mode<synchronous>, transform_indices = @transform_4, window_bounds = array<i64: 1, 64>}, {pipeline_mode = #tpu.pipeline_mode<synchronous>, transform_indices = @transform_5, window_bounds = array<i64: 64, 16>}, {pipeline_mode = #tpu.pipeline_mode<synchronous>, transform_indices = @transform_6, window_bounds = array<i64: 1, 16>}, {transform_indices = @transform_7, window_bounds = array<i64: 16, 16>}, {transform_indices = @transform_8, window_bounds = array<i64: 16, 16>}]} {
    %c0 = arith.constant 0 : index
    %c0_0 = arith.constant 0 : index
    %0 = vector.load %arg1[%c0, %c0_0] : memref<16x32xf32, #tpu.memory_space<vmem>>, vector<16x32xf32>
    %1 = arith.truncf %0 : vector<16x32xf32> to vector<16x32xbf16>
    %c0_1 = arith.constant 0 : index
    %c0_2 = arith.constant 0 : index
    %2 = vector.load %arg2[%c0_1, %c0_2] : memref<32x128xbf16, #tpu.memory_space<vmem>>, vector<32x128xbf16>
    %cst = arith.constant dense<0.000000e+00> : vector<16x128xf32>
    %3 = tpu.matmul %1, %2, %cst {dimension_numbers = #tpu.dot_dimension_numbers<[1], [0], [0], [1], [0, 0, 1, 1], [], []>} : vector<16x32xbf16>, vector<32x128xbf16>, vector<16x128xf32> -> vector<16x128xf32>
    %c0_3 = arith.constant 0 : index
    %c0_4 = arith.constant 0 : index
    %4 = vector.load %arg3[%c0_3, %c0_4] : memref<1x128xf32, #tpu.memory_space<vmem>>, vector<1x128xf32>
    %5 = vector.broadcast %4 : vector<1x128xf32> to vector<16x128xf32>
    %6 = arith.addf %3, %5 : vector<16x128xf32>
    %cst_5 = arith.constant 0.000000e+00 : f32
    %7 = vector.broadcast %cst_5 : f32 to vector<16x128xf32>
    %8 = arith.maximumf %6, %7 : vector<16x128xf32>
    %9 = arith.truncf %8 : vector<16x128xf32> to vector<16x128xbf16>
    %c0_6 = arith.constant 0 : index
    %c0_7 = arith.constant 0 : index
    %10 = vector.load %arg4[%c0_6, %c0_7] : memref<128x64xbf16, #tpu.memory_space<vmem>>, vector<128x64xbf16>
    %cst_8 = arith.constant dense<0.000000e+00> : vector<16x64xf32>
    %11 = tpu.matmul %9, %10, %cst_8 {dimension_numbers = #tpu.dot_dimension_numbers<[1], [0], [0], [1], [0, 0, 1, 1], [], []>} : vector<16x128xbf16>, vector<128x64xbf16>, vector<16x64xf32> -> vector<16x64xf32>
    %c0_9 = arith.constant 0 : index
    %c0_10 = arith.constant 0 : index
    %12 = vector.load %arg5[%c0_9, %c0_10] : memref<1x64xf32, #tpu.memory_space<vmem>>, vector<1x64xf32>
    %13 = vector.broadcast %12 : vector<1x64xf32> to vector<16x64xf32>
    %14 = arith.addf %11, %13 : vector<16x64xf32>
    %cst_11 = arith.constant 0.000000e+00 : f32
    %15 = vector.broadcast %cst_11 : f32 to vector<16x64xf32>
    %16 = arith.maximumf %14, %15 : vector<16x64xf32>
    %17 = arith.truncf %16 : vector<16x64xf32> to vector<16x64xbf16>
    %c0_12 = arith.constant 0 : index
    %c0_13 = arith.constant 0 : index
    %18 = vector.load %arg6[%c0_12, %c0_13] : memref<64x16xbf16, #tpu.memory_space<vmem>>, vector<64x16xbf16>
    %cst_14 = arith.constant dense<0.000000e+00> : vector<16x16xf32>
    %19 = tpu.matmul %17, %18, %cst_14 {dimension_numbers = #tpu.dot_dimension_numbers<[1], [0], [0], [1], [0, 0, 1, 1], [], []>} : vector<16x64xbf16>, vector<64x16xbf16>, vector<16x16xf32> -> vector<16x16xf32>
    %c0_15 = arith.constant 0 : index
    %c0_16 = arith.constant 0 : index
    %20 = vector.load %arg7[%c0_15, %c0_16] : memref<1x16xf32, #tpu.memory_space<vmem>>, vector<1x16xf32>
    %21 = vector.broadcast %20 : vector<1x16xf32> to vector<16x16xf32>
    %22 = arith.addf %19, %21 : vector<16x16xf32>
    %c0_17 = arith.constant 0 : index
    %c0_18 = arith.constant 0 : index
    %23 = vector.load %arg8[%c0_17, %c0_18] : memref<16x16xf32, #tpu.memory_space<vmem>>, vector<16x16xf32>
    tpu.vector_store %arg8[%c0_17, %c0_18], %22 {strides = array<i32>} : memref<16x16xf32, #tpu.memory_space<vmem>>, vector<16x16xf32>,
    %cst_19 = arith.constant dense<0xFF800000> : vector<16xf32>
    %24 = vector.multi_reduction <maximumf>, %22, %cst_19 [1] : vector<16x16xf32> to vector<16xf32>
    %25 = vector.shape_cast %24 : vector<16xf32> to vector<16x1xf32>
    %26 = vector.broadcast %25 : vector<16x1xf32> to vector<16x16xf32>
    %27 = arith.subf %22, %26 : vector<16x16xf32>
    %28 = math.exp %27 : vector<16x16xf32>
    %cst_20 = arith.constant dense<0.000000e+00> : vector<16xf32>
    %29 = vector.multi_reduction <add>, %28, %cst_20 [1] : vector<16x16xf32> to vector<16xf32>
    %30 = vector.shape_cast %29 : vector<16xf32> to vector<16x1xf32>
    %31 = math.log %30 : vector<16x1xf32>
    %32 = vector.broadcast %31 : vector<16x1xf32> to vector<16x16xf32>
    %33 = arith.subf %27, %32 : vector<16x16xf32>
    %c0_21 = arith.constant 0 : index
    %c0_22 = arith.constant 0 : index
    %34 = vector.load %arg9[%c0_21, %c0_22] : memref<16x16xf32, #tpu.memory_space<vmem>>, vector<16x16xf32>
    tpu.vector_store %arg9[%c0_21, %c0_22], %33 {strides = array<i32>} : memref<16x16xf32, #tpu.memory_space<vmem>>, vector<16x16xf32>,
    return
  }
  func.func @transform_0(%arg0: i32) -> (i32, i32) {
    %c0_i32 = arith.constant 0 : i32
    %c0_i32_0 = arith.constant 0 : i32
    return %arg0, %c0_i32 : i32, i32
  }
  func.func @transform_1(%arg0: i32) -> (i32, i32) {
    %c0_i32 = arith.constant 0 : i32
    %c0_i32_0 = arith.constant 0 : i32
    %c0_i32_1 = arith.constant 0 : i32
    return %c0_i32, %c0_i32_0 : i32, i32
  }
  func.func @transform_2(%arg0: i32) -> (i32, i32) {
    %c0_i32 = arith.constant 0 : i32
    %c0_i32_0 = arith.constant 0 : i32
    %c0_i32_1 = arith.constant 0 : i32
    return %c0_i32, %c0_i32_0 : i32, i32
  }
  func.func @transform_3(%arg0: i32) -> (i32, i32) {
    %c0_i32 = arith.constant 0 : i32
    %c0_i32_0 = arith.constant 0 : i32
    %c0_i32_1 = arith.constant 0 : i32
    return %c0_i32, %c0_i32_0 : i32, i32
  }
  func.func @transform_4(%arg0: i32) -> (i32, i32) {
    %c0_i32 = arith.constant 0 : i32
    %c0_i32_0 = arith.constant 0 : i32
    %c0_i32_1 = arith.constant 0 : i32
    return %c0_i32, %c0_i32_0 : i32, i32
  }
  func.func @transform_5(%arg0: i32) -> (i32, i32) {
    %c0_i32 = arith.constant 0 : i32
    %c0_i32_0 = arith.constant 0 : i32
    %c0_i32_1 = arith.constant 0 : i32
    return %c0_i32, %c0_i32_0 : i32, i32
  }
  func.func @transform_6(%arg0: i32) -> (i32, i32) {
    %c0_i32 = arith.constant 0 : i32
    %c0_i32_0 = arith.constant 0 : i32
    %c0_i32_1 = arith.constant 0 : i32
    return %c0_i32, %c0_i32_0 : i32, i32
  }
  func.func @transform_7(%arg0: i32) -> (i32, i32) {
    %c0_i32 = arith.constant 0 : i32
    %c0_i32_0 = arith.constant 0 : i32
    return %arg0, %c0_i32 : i32, i32
  }
  func.func @transform_8(%arg0: i32) -> (i32, i32) {
    %c0_i32 = arith.constant 0 : i32
    %c0_i32_0 = arith.constant 0 : i32
    return %arg0, %c0_i32 : i32, i32
  }
}

</mosaic_0001>

<bundles_post_ra>
// kernel: mlp_forward.1
= control target key start
LH: loop header
LB: loop body
LE: loop exit
PB: predicated region body
PF: predicated region fallthrough
CT: control target
= control target key end

     0   :  { %14 = vsyncpa [#allocation3], 0  ;;  %s538_s0 = inlined_call_operand.vmem [shape: f32[8,32], index: 0, kind: input, shape index: {}]   ;;  %s539_s1 = inlined_call_operand.vmem [shape: bf16[32,128], index: 1, kind: input, shape index: {}]   ;;  %s540_s2 = inlined_call_operand.vmem [shape: f32[1,128], index: 2, kind: input, shape index: {}]   ;;  %s541_s3 = inlined_call_operand.vmem [shape: bf16[128,64], index: 3, kind: input, shape index: {}]   ;;  %s542_s4 = inlined_call_operand.vmem [shape: f32[1,64], index: 4, kind: input, shape index: {}]   ;;  %s543_s5 = inlined_call_operand.vmem [shape: bf16[64,16], index: 5, kind: input, shape index: {}]   ;;  %s544_s6 = inlined_call_operand.vmem [shape: f32[1,16], index: 6, kind: input, shape index: {}]   ;;  %s545_s7 = inlined_call_operand.hbm [shape: f32[8,16], index: 7, kind: output, shape index: {0}]   ;;  %s546_s8 = inlined_call_operand.hbm [shape: f32[8,16], index: 8, kind: output, shape index: {1}]  }
   0x1   :  { %15 = vsyncpa [#allocation5], 0  ;;  %v338_v0 = vld [vmem:[%s539_s1 + $0x8] sm:$0xff]  ;;  %v346_v1 = vld [vmem:[%s541_s3 + $0x38] sm:$0xff]  ;;  %vm54_vm0 = vcmask 261120   ;;  %vm196_vm1 = vcmask 523264  }
   0x2   :  { %64 = vmatpush.bf16.msra.mxu0 %v338_v0  ;;  %v337_v2 = vld [vmem:[%s539_s1] sm:$0xff]  ;;  %v32_v4 = vld [vmem:[%s538_s0 + $0x8] sm:$0xff]  ;;  %143 = vmatpush.bf16.msra.mxu1 %v346_v1  ;;  %v345_v5 = vld [vmem:[%s541_s3 + $0x30] sm:$0xff]  ;;  %vm214_vm2 = vcmask 130048  }
   0x3   :  { %v31_v3 = vld [vmem:[%s538_s0] sm:$0xff]  ;;  %v344_v7 = vld [vmem:[%s541_s3 + $0x28] sm:$0xff]  ;;  %v342_v9 = vld [vmem:[%s541_s3 + $0x18] sm:$0xff] }
   0x4   :  { %v33_v6 = vpack.c.bf16 %v32_v4, %v31_v3  ;;  %v343_v8 = vld [vmem:[%s541_s3 + $0x20] sm:$0xff]  ;;  %v341_v10 = vld [vmem:[%s541_s3 + $0x10] sm:$0xff]  ;;  %v340_v11 = vld [vmem:[%s541_s3 + $0x8] sm:$0xff] }
   0x5   :  { %v339_v12 = vld [vmem:[%s541_s3] sm:$0xff]  ;;  %v350_v21 = vld [vmem:[%s543_s5 + $0x18] sm:$0xff]  ;;  %v349_v22 = vld [vmem:[%s543_s5 + $0x10] sm:$0xff] }
   0x6   :  { %65 = vmatpush.bf16.msra.mxu0 %v337_v2  ;;  %144 = vmatpush.bf16.msra.mxu1 %v345_v5  ;;  %v355_v14 = vld [vmem:[%s540_s2] ss:$0 sm:$0xff]  ;;  %v348_v23 = vld [vmem:[%s543_s5 + $0x8] sm:$0xff] }
   0x7   :  { %204 = vmatpush.bf16.msra.mxu2 %v350_v21  ;;  %v347_v24 = vld [vmem:[%s543_s5] sm:$0xff] }
   0x8   :  { %v356_v26 = vld [vmem:[%s542_s4] ss:$0 sm:$0xff] }
   0x9   :  { %287 = vmatmul.msk.bf16.vlgmr.msra.gmra.mxu0 %vm54_vm0, %v33_v6  ;;  %v357_v33 = vld [vmem:[%s544_s6] ss:$0 sm:$0xff] }
   0xa   :  { %145 = vmatpush.bf16.msra.mxu1 %v344_v7 }
   0xb   :  { %205 = vmatpush.bf16.msra.mxu2 %v349_v22 }
   0xe   :  { %146 = vmatpush.bf16.msra.mxu1 %v343_v8 }
   0xf   :  { %206 = vmatpush.bf16.msra.mxu2 %v348_v23 }
  0x12   :  { %147 = vmatpush.bf16.msra.mxu1 %v342_v9 }
  0x13   :  { %207 = vmatpush.bf16.msra.mxu2 %v347_v24 }
  0x16   :  { %148 = vmatpush.bf16.msra.mxu1 %v341_v10 }
  0x1a   :  { %149 = vmatpush.bf16.msra.mxu1 %v340_v11 }
  0x1e   :  { %150 = vmatpush.bf16.msra.mxu1 %v339_v12 }
  0x86   :  { %v67_v13 = vpop.f32.mrf.mxu0 }
  0x87   :  { %v68_v15 = vadd.f32 %v355_v14, %v67_v13 }
  0x89   :  { %v72_v18 = vmax.f32 %v68_v15, 0.0 }
  0x8e   :  { %v69_v16 = vpop.f32.mrf.mxu0 }
  0x8f   :  { %v70_v17 = vadd.f32 %v355_v14, %v69_v16 }
  0x91   :  { %v73_v19 = vmax.f32 %v70_v17, 0.0 }
  0x93   :  { %v74_v20 = vpack.c.bf16 %v73_v19, %v72_v18 }
  0x95   :  { %151 = vmatmul.bf16.vlgmr.msra.gmra.mxu1 %v74_v20 }
 0x112   :  { %v152_v25 = vpop.f32.mrf.mxu1 }
 0x113   :  { %v153_v27 = vadd.f32 %v356_v26, %v152_v25 }
 0x115   :  { %v157_v30 = vmax.f32 %v153_v27, 0.0 }
 0x11a   :  { %v154_v28 = vpop.f32.mrf.mxu1 }
 0x11b   :  { %v155_v29 = vadd.f32 %v356_v26, %v154_v28 }
 0x11d   :  { %v158_v31 = vmax.f32 %v155_v29, 0.0 }
 0x11f   :  { %v159_v32 = vpack.c.bf16 %v158_v31, %v157_v30 }
 0x121   :  { %336 = vmatmul.msk.bf16.vlgmr.msra.gmra.mxu2 %vm196_vm1, %v159_v32 }
 0x1a4   :  { %v209_v34 = vpop.f32.mrf.mxu2 }
 0x1a5   :  { %v210_v35 = vadd.f32 %v357_v33, %v209_v34 }
 0x1a7   :  { %215 = vst.msk [vmem:[#allocation2] sm:$0xff] %vm214_vm2, %v210_v35  ;;  %v217_v36 = vsel %vm214_vm2, %v210_v35, -inf }
 0x1a8   :  { %218 = vmax.xlane.f32.xlu0 %v217_v36 }
 0x1ac   :  { %v211_v37 = vpop.f32.mrf.mxu2 }
 0x1ad   :  { %v212_v38 = vadd.f32 %v357_v33, %v211_v37 }
 0x1af   :  { %216 = vst.msk [vmem:[#allocation2 + $0x8] sm:$0xff] %vm214_vm2, %v212_v38  ;;  %v220_v39 = vsel %vm214_vm2, %v212_v38, -inf }
 0x1b0   :  { %221 = vmax.xlane.f32.xlu0 %v220_v39 }
 0x21b   :  { %v219_v40 = vpop.xlane.xlu0 %218 }
 0x21c   :  { %v223_v41 = vsub.f32 %v210_v35, %v219_v40 }
 0x21e   :  { %v225_v42 = vmul.f32 1.442695, %v223_v41 }
 0x220   :  { %358 = vpow2.f32 %v225_v42 }
 0x223   :  { %v222_v43 = vpop.xlane.xlu0 %221 }
 0x224   :  { %v224_v44 = vsub.f32 %v212_v38, %v222_v43 }
 0x226   :  { %v359_v45 = vpop.eup %358  ;;  %v227_v46 = vmul.f32 1.442695, %v224_v44 }
 0x227   :  { %v229_v47 = vsel %vm214_vm2, %v359_v45, 0.0 }
 0x228   :  { %360 = vpow2.f32 %v227_v46  ;;  %230 = vadd.xlane.f32.xlu1 %v229_v47 }
 0x22e   :  { %v361_v48 = vpop.eup %360 }
 0x22f   :  { %v232_v49 = vsel %vm214_vm2, %v361_v48, 0.0 }
 0x230   :  { %233 = vadd.xlane.f32.xlu1 %v232_v49 }
 0x29b   :  { %v231_v50 = vpop.xlane.xlu1 %230 }
 0x29c   :  { %362 = vlog2.f32 %v231_v50 }
 0x2a2   :  { %v363_v51 = vpop.eup %362 }
 0x2a3   :  { %v236_v52 = vmul.f32 0.6931472, %v363_v51  ;;  %v234_v53 = vpop.xlane.xlu1 %233 }
 0x2a4   :  { %364 = vlog2.f32 %v234_v53 }
 0x2a5   :  { %v239_v54 = vsub.f32 %v223_v41, %v236_v52 }
 0x2a7   :  { %241 = vst.msk [vmem:[#allocation4] sm:$0xff] %vm214_vm2, %v239_v54 }
 0x2aa   :  { %v365_v55 = vpop.eup %364 }
 0x2ab   :  { %v238_v56 = vmul.f32 0.6931472, %v365_v55 }
 0x2ad   :  { %v240_v57 = vsub.f32 %v224_v44, %v238_v56 }
 0x2af   :  { %242 = vst.msk [vmem:[#allocation4 + $0x8] sm:$0xff] %vm214_vm2, %v240_v57 }
 0x2b0   :  { %246 = vsyncadd [#allocation3], 128  ;;  %s249_s6 = sshll.u32 %s545_s7, 4  ;;  %s418_s17 = smov [#allocation2]   ;;  %s250_s6 = int_to_ptr.hbm [resolvable:$true] %s249_s6 }
 0x2b1   :  { %s247_s18 = sshll.u32 %s418_s17, 4  ;;  %s419_s1 = smov 128   ;;  %s248_s18 = int_to_ptr.vmem [resolvable:$true] %s247_s18 }
 0x2b2   :  { %s420_s19 = smov 8  }
 0x2b3   :  { %255 = dma.vmem_to_hbm [thread:$0]  %s248_s18, 128, %s250_s6, [#allocation3], %s419_s1, %s419_s1, %s420_s19  }
 0x2b4   :  { %259 = vsyncadd [#allocation5], 128  ;;  %s262_s21 = sshll.u32 %s546_s8, 4  ;;  %s421_s22 = smov [#allocation4]   ;;  %s263_s21 = int_to_ptr.hbm [resolvable:$true] %s262_s21 }
 0x2b5   :  { %s260_s23 = sshll.u32 %s421_s22, 4  ;;  %s261_s23 = int_to_ptr.vmem [resolvable:$true] %s260_s23 }
 0x2b6   :  { %268 = dma.vmem_to_hbm [thread:$0]  %s261_s23, 128, %s263_s21, [#allocation5], %s419_s1, %s419_s1, %s420_s19  }
 0x2b7   :  { %414 = dma.done.wait [#allocation3], 256  }
 0x2b8   :  { %415 = vsyncadd [#allocation3], 4294967040 }
 0x2b9   :  { %416 = dma.done.wait [#allocation5], 256  }
 0x2ba   :  { %417 = vsyncadd [#allocation5], 4294967040 }
 0x2bb   :  { %277 = vsyncpa [#allocation3], 1 }
 0x2bc   :  { %278 = vsyncpa [#allocation5], 1 }

</bundles_post_ra>
